<compile_context>
chip_gen: v7x
topology: tpu7x:2x2x1
jax: 0.10.0
libtpu: 0.0.40
codegen_flags: <defaults>
</compile_context>

<pallas_src>
import jax
import jax.numpy as jnp
from jax.experimental import pallas as pl
from jax.experimental.pallas import tpu as pltpu

_LANE = 128
_SUBLANE = 8


def _round_up(x, m):
    return (x + m - 1) // m * m


# ---------------------------------------------------------------------------
# Kernel
# ---------------------------------------------------------------------------
def _full_model_kernel(x_ref, wf_ref, bf_ref, wl_ref, bl_ref, o_ref, acc_ref):
    # x_ref:   [TB, TF] f32   flattened-image tile (streamed; bf16 cast here)
    # wf_ref:  [TF, Dp] bf16  feature-projection weight tile
    # bf_ref:  [1, Dp]  f32   feature bias            (grid-invariant)
    # wl_ref:  [Dp, Kp] bf16  head weight [in, out]   (grid-invariant)
    # bl_ref:  [1, Kp]  f32   head bias               (grid-invariant)
    # o_ref:   [TB, Kp] f32   logits tile
    # acc_ref: [TB, Dp] f32   feature accumulator, resident across the F axis
    k = pl.program_id(1)

    @pl.when(k == 0)
    def _():
        acc_ref[...] = jnp.zeros_like(acc_ref)

    # Feature extractor projection: bf16 MXU operands, f32 accumulation.
    acc_ref[...] += jnp.dot(
        x_ref[...].astype(jnp.bfloat16), wf_ref[...],
        preferred_element_type=jnp.float32)

    @pl.when(k == pl.num_programs(1) - 1)
    def _():
        feat = acc_ref[...] + bf_ref[...]
        # x / torch.linalg.norm(x, axis=1, keepdims=True); single EUP rsqrt.
        # TODO(synk): +1e-12 guards zero rows (torch would emit inf/nan there).
        inv = jax.lax.rsqrt(jnp.sum(feat * feat, axis=1, keepdims=True) + 1e-12)
        feat = feat * inv
        # Linear head: y = feat @ W^T + b (W pre-transposed/padded in wrapper).
        o_ref[...] = (
            jnp.dot(feat.astype(jnp.bfloat16), wl_ref[...],
                    preferred_element_type=jnp.float32) + bl_ref[...]
        ).astype(o_ref.dtype)


# ---------------------------------------------------------------------------
# One-time parameter preparation (do at model init, NOT per forward call).
# ---------------------------------------------------------------------------
def prepare_params(w_feat, b_feat, w_lin, b_lin):
    """Pad to lane-dense widths, transpose the head, cast matmul operands to
    bf16.  Zero padding is mathematically inert for both matmuls and the norm.

    w_feat : [F, D]   feature-extractor projection weight
    b_feat : [D]
    w_lin  : [K, D]   PyTorch nn.Linear convention ([out, in])
    b_lin  : [K]
    """
    F, D = int(w_feat.shape[0]), int(w_feat.shape[1])
    K = int(w_lin.shape[0])
    Dp = _round_up(D, _LANE)
    Kp = _round_up(K, _LANE)

    wf_p = jnp.zeros((F, Dp), jnp.bfloat16).at[:, :D].set(
        w_feat.astype(jnp.bfloat16))
    bf_p = jnp.zeros((1, Dp), jnp.float32).at[0, :D].set(
        b_feat.astype(jnp.float32))
    wl_p = jnp.zeros((Dp, Kp), jnp.bfloat16).at[:D, :K].set(
        w_lin.T.astype(jnp.bfloat16))
    bl_p = jnp.zeros((1, Kp), jnp.float32).at[0, :K].set(
        b_lin.astype(jnp.float32))

    return dict(wf=wf_p, bf=bf_p, wl=wl_p, bl=bl_p,
                F=F, D=D, K=K, Dp=Dp, Kp=Kp)


# ---------------------------------------------------------------------------
# Tile derivation (VMEM-budgeted; generation-safe defaults).
# ---------------------------------------------------------------------------
def _choose_tiles(B, F, Dp, Kp, *, tb_max, tf_max, budget):
    # --- F (contraction) tile ---
    # Keep F full-extent when modest; otherwise pick the largest 128-multiple
    # that divides F exactly so no OOB garbage ever enters the contraction.
    tf_cap = min(tf_max, max(_LANE, (budget // 2) // (4 * Dp) // _LANE * _LANE))
    if F <= tf_cap:
        TF = F
    else:
        TF = 0
        t = (tf_cap // _LANE) * _LANE
        while t >= _LANE:
            if F % t == 0:
                TF = t
                break
            t -= _LANE
        if TF == 0:
            TF = F  # no lane-aligned divisor: fall back to full extent
    nF = F // TF if TF and F % TF == 0 else 1
    if TF == F:
        nF = 1

    # --- batch tile ---
    wf_bufs = 1 if nF == 1 else 2
    fixed = wf_bufs * TF * Dp * 2 + _SUBLANE * Dp * 4 + Dp * Kp * 2 + _SUBLANE * Kp * 4
    per_row = 2 * TF * 4 + 2 * Kp * 4 + Dp * 4   # x(2buf f32) + out(2buf f32) + acc
    avail = max(budget - fixed, per_row * _SUBLANE)

    if B <= _SUBLANE:
        TB = B                                    # block == full batch extent
    else:
        TB = min(tb_max, max(_SUBLANE, (avail // per_row) // _SUBLANE * _SUBLANE))
        b_pad = _round_up(B, _SUBLANE)
        TB = min(TB, b_pad)
        # Prefer >= 2 batch grid steps so the megacore-"parallel" axis gives
        # both TensorCores work (v7x).
        if TB >= b_pad and B >= 2 * _SUBLANE:
            TB = _round_up(pl.cdiv(B, 2), _SUBLANE)
    nB = (B + TB - 1) // TB
    return TB, TF, nB, nF


def _vmem_bytes_estimate(TB, TF, Dp, Kp, nF):
    tb = _round_up(TB, _SUBLANE)
    wf_bufs = 1 if nF == 1 else 2
    return (2 * tb * TF * 4           # x double buffer (f32)
            + wf_bufs * TF * Dp * 2   # projection weight
            + _SUBLANE * Dp * 4       # feature bias
            + Dp * Kp * 2             # head weight (bf16)
            + _SUBLANE * Kp * 4       # head bias
            + 2 * tb * Kp * 4         # output double buffer
            + tb * Dp * 4)            # accumulator scratch


# ---------------------------------------------------------------------------
# Forward pass
# ---------------------------------------------------------------------------
def full_model(x_nchw, params, *, tb_max=2048, tf_max=8192,
               vmem_budget_bytes=24 << 20):
    """x_nchw: [B, C, H, W].  params: output of prepare_params().
    Returns logits [B, K] float32."""
    B = int(x_nchw.shape[0])
    F, D, K = params["F"], params["D"], params["K"]
    Dp, Kp = params["Dp"], params["Kp"]
    assert x_nchw.shape[1] * x_nchw.shape[2] * x_nchw.shape[3] == F

    # Same row-major order as torch .reshape(B, -1); no pad / cast copy of x.
    x2d = x_nchw.reshape(B, F)

    TB, TF, nB, nF = _choose_tiles(B, F, Dp, Kp, tb_max=tb_max, tf_max=tf_max,
                                   budget=vmem_budget_bytes)
    vmem_bytes = _vmem_bytes_estimate(TB, TF, Dp, Kp, nF)
    vmem_limit = int(min(max(2 * vmem_bytes, vmem_bytes + (8 << 20)), 56 << 20))

    cost = pl.CostEstimate(
        flops=int(2 * B * F * Dp + 2 * B * Dp * Kp),
        transcendentals=int(B),
        bytes_accessed=int(B * F * x2d.dtype.itemsize
                           + F * Dp * 2 + Dp * Kp * 2 + (Dp + Kp) * 4
                           + B * Kp * 4),
    )

    def _call(single_buffer_weights):
        buf1 = ({"pipeline_mode": pl.Buffered(1)}
                if single_buffer_weights else {})
        wf_kw = buf1 if nF == 1 else {}   # wf is streamed when F is tiled
        in_specs = [
            pl.BlockSpec((TB, TF), lambda i, k: (i, k)),          # streamed x
            pl.BlockSpec((TF, Dp), lambda i, k: (k, 0), **wf_kw),  # proj weight
            pl.BlockSpec((1, Dp), lambda i, k: (0, 0), **buf1),    # proj bias
            pl.BlockSpec((Dp, Kp), lambda i, k: (0, 0), **buf1),   # head weight
            pl.BlockSpec((1, Kp), lambda i, k: (0, 0), **buf1),    # head bias
        ]
        return pl.pallas_call(
            _full_model_kernel,
            out_shape=jax.ShapeDtypeStruct((B, Kp), jnp.float32),
            grid_spec=pltpu.PrefetchScalarGridSpec(
                num_scalar_prefetch=0,
                grid=(nB, nF),
                in_specs=in_specs,
                out_specs=pl.BlockSpec((TB, Kp), lambda i, k: (i, 0)),
                scratch_shapes=[pltpu.VMEM((TB, Dp), jnp.float32)],
            ),
            compiler_params=pltpu.CompilerParams(
                dimension_semantics=("parallel", "arbitrary"),
                vmem_limit_bytes=vmem_limit,
            ),
            cost_estimate=cost,
        )(x2d, params["wf"], params["bf"], params["wl"], params["bl"])

    try:
        out_p = _call(single_buffer_weights=True)
    except Exception:
        # pipeline_mode=pl.Buffered(1) not supported by this jax/libtpu combo:
        # fall back to default double buffering (identical numerics).
        out_p = _call(single_buffer_weights=False)

    return out_p[:, :K]


# ---------------------------------------------------------------------------
# Self-test
# ---------------------------------------------------------------------------
if __name__ == "__main__":
    B, C, H, W = 2, 4, 16, 16
    F = C * H * W          # 1024 flattened image features
    D = 32                 # feature_extractor output dim
    K = 8                  # linear head output classes

    key = jax.random.PRNGKey(0)
    k_x, k_wf, k_bf, k_wl, k_bl = jax.random.split(key, 5)

    x = jax.random.normal(k_x, (B, C, H, W), dtype=jnp.float32)
    w_feat = jax.random.normal(k_wf, (F, D), dtype=jnp.float32) * 0.02
    b_feat = jax.random.normal(k_bf, (D,), dtype=jnp.float32) * 0.02
    w_lin = jax.random.normal(k_wl, (K, D), dtype=jnp.float32) * 0.1
    b_lin = jax.random.normal(k_bl, (K,), dtype=jnp.float32) * 0.1

    params = prepare_params(w_feat, b_feat, w_lin, b_lin)   # once, at "init"
    out = full_model(x, params)
    out = jax.block_until_ready(out)

    # Pure f32 reference of the PyTorch forward.  The kernel uses bf16 MXU
    # operands with f32 accumulation, hence the stated tolerance.
    feat_ref = x.reshape(B, F) @ w_feat + b_feat
    feat_ref = feat_ref / jnp.linalg.norm(feat_ref, axis=1, keepdims=True)
    ref = feat_ref @ w_lin.T + b_lin

    assert out.shape == (B, K), out.shape
    assert bool(jnp.allclose(out, ref, atol=3e-2, rtol=3e-2)), (out, ref)

    print("KERNEL_OK")
</pallas_src>

<mosaic_0001>
module attributes {stable_mosaic.version = 11 : i64} {
  func.func @_full_model_kernel(%arg0: i32, %arg1: i32, %arg2: memref<2x1024xf32, #tpu.memory_space<vmem>>, %arg3: memref<1024x128xbf16, #tpu.memory_space<vmem>>, %arg4: memref<1x128xf32, #tpu.memory_space<vmem>>, %arg5: memref<128x128xbf16, #tpu.memory_space<vmem>>, %arg6: memref<1x128xf32, #tpu.memory_space<vmem>>, %arg7: memref<2x128xf32, #tpu.memory_space<vmem>>, %arg8: memref<2x128xf32, #tpu.memory_space<vmem>>) attributes {dimension_semantics = [#tpu.dimension_semantics<parallel>, #tpu.dimension_semantics<arbitrary>], iteration_bounds = array<i64: 1, 1>, scalar_prefetch = 0 : i64, scratch_operands = 1 : i64, tpu.core_type = #tpu.core_type<tc>, window_params = [{transform_indices = @transform_0, window_bounds = array<i64: 2, 1024>}, {pipeline_mode = #tpu.pipeline_mode<synchronous>, transform_indices = @transform_1, window_bounds = array<i64: 1024, 128>}, {pipeline_mode = #tpu.pipeline_mode<synchronous>, transform_indices = @transform_2, window_bounds = array<i64: 1, 128>}, {pipeline_mode = #tpu.pipeline_mode<synchronous>, transform_indices = @transform_3, window_bounds = array<i64: 128, 128>}, {pipeline_mode = #tpu.pipeline_mode<synchronous>, transform_indices = @transform_4, window_bounds = array<i64: 1, 128>}, {transform_indices = @transform_5, window_bounds = array<i64: 2, 128>}]} {
    %c0_i32 = arith.constant 0 : i32
    %0 = arith.cmpi eq, %arg1, %c0_i32 : i32
    %1 = arith.extui %0 : i1 to i32
    %c0_i32_0 = arith.constant 0 : i32
    %2 = arith.cmpi ne, %1, %c0_i32_0 : i32
    scf.if %2 {
      %cst_10 = arith.constant 0.000000e+00 : f32
      %13 = vector.broadcast %cst_10 : f32 to vector<2x128xf32>
      %c0_11 = arith.constant 0 : index
      %c0_12 = arith.constant 0 : index
      %14 = vector.load %arg8[%c0_11, %c0_12] : memref<2x128xf32, #tpu.memory_space<vmem>>, vector<2x128xf32>
      tpu.vector_store %arg8[%c0_11, %c0_12], %13 {strides = array<i32>} : memref<2x128xf32, #tpu.memory_space<vmem>>, vector<2x128xf32>,
    } else {
    }
    %c0 = arith.constant 0 : index
    %c0_1 = arith.constant 0 : index
    %3 = vector.load %arg8[%c0, %c0_1] : memref<2x128xf32, #tpu.memory_space<vmem>>, vector<2x128xf32>
    %c0_2 = arith.constant 0 : index
    %c0_3 = arith.constant 0 : index
    %4 = vector.load %arg2[%c0_2, %c0_3] : memref<2x1024xf32, #tpu.memory_space<vmem>>, vector<2x1024xf32>
    %5 = arith.truncf %4 : vector<2x1024xf32> to vector<2x1024xbf16>
    %c0_4 = arith.constant 0 : index
    %c0_5 = arith.constant 0 : index
    %6 = vector.load %arg3[%c0_4, %c0_5] : memref<1024x128xbf16, #tpu.memory_space<vmem>>, vector<1024x128xbf16>
    %cst = arith.constant dense<0.000000e+00> : vector<2x128xf32>
    %7 = tpu.matmul %5, %6, %cst {dimension_numbers = #tpu.dot_dimension_numbers<[1], [0], [0], [1], [0, 0, 1, 1], [], []>} : vector<2x1024xbf16>, vector<1024x128xbf16>, vector<2x128xf32> -> vector<2x128xf32>
    %8 = arith.addf %3, %7 : vector<2x128xf32>
    %c0_6 = arith.constant 0 : index
    %c0_7 = arith.constant 0 : index
    %9 = vector.load %arg8[%c0_6, %c0_7] : memref<2x128xf32, #tpu.memory_space<vmem>>, vector<2x128xf32>
    tpu.vector_store %arg8[%c0_6, %c0_7], %8 {strides = array<i32>} : memref<2x128xf32, #tpu.memory_space<vmem>>, vector<2x128xf32>,
    %c0_i32_8 = arith.constant 0 : i32
    %10 = arith.cmpi eq, %arg1, %c0_i32_8 : i32
    %11 = arith.extui %10 : i1 to i32
    %c0_i32_9 = arith.constant 0 : i32
    %12 = arith.cmpi ne, %11, %c0_i32_9 : i32
    scf.if %12 {
      %c0_10 = arith.constant 0 : index
      %c0_11 = arith.constant 0 : index
      %13 = vector.load %arg8[%c0_10, %c0_11] : memref<2x128xf32, #tpu.memory_space<vmem>>, vector<2x128xf32>
      %c0_12 = arith.constant 0 : index
      %c0_13 = arith.constant 0 : index
      %14 = vector.load %arg4[%c0_12, %c0_13] : memref<1x128xf32, #tpu.memory_space<vmem>>, vector<1x128xf32>
      %15 = vector.broadcast %14 : vector<1x128xf32> to vector<2x128xf32>
      %16 = arith.addf %13, %15 : vector<2x128xf32>
      %17 = arith.mulf %16, %16 : vector<2x128xf32>
      %cst_14 = arith.constant dense<0.000000e+00> : vector<2xf32>
      %18 = vector.multi_reduction <add>, %17, %cst_14 [1] : vector<2x128xf32> to vector<2xf32>
      %19 = vector.shape_cast %18 : vector<2xf32> to vector<2x1xf32>
      %cst_15 = arith.constant 9.99999996E-13 : f32
      %20 = vector.broadcast %cst_15 : f32 to vector<2x1xf32>
      %21 = arith.addf %19, %20 : vector<2x1xf32>
      %22 = math.rsqrt %21 : vector<2x1xf32>
      %23 = vector.broadcast %22 : vector<2x1xf32> to vector<2x128xf32>
      %24 = arith.mulf %16, %23 : vector<2x128xf32>
      %25 = arith.truncf %24 : vector<2x128xf32> to vector<2x128xbf16>
      %c0_16 = arith.constant 0 : index
      %c0_17 = arith.constant 0 : index
      %26 = vector.load %arg5[%c0_16, %c0_17] : memref<128x128xbf16, #tpu.memory_space<vmem>>, vector<128x128xbf16>
      %cst_18 = arith.constant dense<0.000000e+00> : vector<2x128xf32>
      %27 = tpu.matmul %25, %26, %cst_18 {dimension_numbers = #tpu.dot_dimension_numbers<[1], [0], [0], [1], [0, 0, 1, 1], [], []>} : vector<2x128xbf16>, vector<128x128xbf16>, vector<2x128xf32> -> vector<2x128xf32>
      %c0_19 = arith.constant 0 : index
      %c0_20 = arith.constant 0 : index
      %28 = vector.load %arg6[%c0_19, %c0_20] : memref<1x128xf32, #tpu.memory_space<vmem>>, vector<1x128xf32>
      %29 = vector.broadcast %28 : vector<1x128xf32> to vector<2x128xf32>
      %30 = arith.addf %27, %29 : vector<2x128xf32>
      %c0_21 = arith.constant 0 : index
      %c0_22 = arith.constant 0 : index
      %31 = vector.load %arg7[%c0_21, %c0_22] : memref<2x128xf32, #tpu.memory_space<vmem>>, vector<2x128xf32>
      tpu.vector_store %arg7[%c0_21, %c0_22], %30 {strides = array<i32>} : memref<2x128xf32, #tpu.memory_space<vmem>>, vector<2x128xf32>,
    } else {
    }
    return
  }
  func.func @transform_0(%arg0: i32, %arg1: i32) -> (i32, i32) {
    %c0_i32 = arith.constant 0 : i32
    return %arg0, %arg1 : i32, i32
  }
  func.func @transform_1(%arg0: i32, %arg1: i32) -> (i32, i32) {
    %c0_i32 = arith.constant 0 : i32
    %c0_i32_0 = arith.constant 0 : i32
    return %arg1, %c0_i32 : i32, i32
  }
  func.func @transform_2(%arg0: i32, %arg1: i32) -> (i32, i32) {
    %c0_i32 = arith.constant 0 : i32
    %c0_i32_0 = arith.constant 0 : i32
    %c0_i32_1 = arith.constant 0 : i32
    return %c0_i32, %c0_i32_0 : i32, i32
  }
  func.func @transform_3(%arg0: i32, %arg1: i32) -> (i32, i32) {
    %c0_i32 = arith.constant 0 : i32
    %c0_i32_0 = arith.constant 0 : i32
    %c0_i32_1 = arith.constant 0 : i32
    return %c0_i32, %c0_i32_0 : i32, i32
  }
  func.func @transform_4(%arg0: i32, %arg1: i32) -> (i32, i32) {
    %c0_i32 = arith.constant 0 : i32
    %c0_i32_0 = arith.constant 0 : i32
    %c0_i32_1 = arith.constant 0 : i32
    return %c0_i32, %c0_i32_0 : i32, i32
  }
  func.func @transform_5(%arg0: i32, %arg1: i32) -> (i32, i32) {
    %c0_i32 = arith.constant 0 : i32
    %c0_i32_0 = arith.constant 0 : i32
    return %arg0, %c0_i32 : i32, i32
  }
}

module attributes {stable_mosaic.version = 11 : i64} {
  func.func @_full_model_kernel(%arg0: i32, %arg1: i32, %arg2: memref<2x1024xf32, #tpu.memory_space<vmem>>, %arg3: memref<1024x128xbf16, #tpu.memory_space<vmem>>, %arg4: memref<1x128xf32, #tpu.memory_space<vmem>>, %arg5: memref<128x128xbf16, #tpu.memory_space<vmem>>, %arg6: memref<1x128xf32, #tpu.memory_space<vmem>>, %arg7: memref<2x128xf32, #tpu.memory_space<vmem>>, %arg8: memref<2x128xf32, #tpu.memory_space<vmem>>) attributes {dimension_semantics = [#tpu.dimension_semantics<parallel>, #tpu.dimension_semantics<arbitrary>], iteration_bounds = array<i64: 1, 1>, scalar_prefetch = 0 : i64, scratch_operands = 1 : i64, tpu.core_type = #tpu.core_type<tc>, window_params = [{transform_indices = @transform_0, window_bounds = array<i64: 2, 1024>}, {transform_indices = @transform_1, window_bounds = array<i64: 1024, 128>}, {pipeline_mode = #tpu.pipeline_mode<synchronous>, transform_indices = @transform_2, window_bounds = array<i64: 1, 128>}, {pipeline_mode = #tpu.pipeline_mode<synchronous>, transform_indices = @transform_3, window_bounds = array<i64: 128, 128>}, {pipeline_mode = #tpu.pipeline_mode<synchronous>, transform_indices = @transform_4, window_bounds = array<i64: 1, 128>}, {transform_indices = @transform_5, window_bounds = array<i64: 2, 128>}]} {
    %c0_i32 = arith.constant 0 : i32
    %0 = arith.cmpi eq, %arg1, %c0_i32 : i32
    %1 = arith.extui %0 : i1 to i32
    %c0_i32_0 = arith.constant 0 : i32
    %2 = arith.cmpi ne, %1, %c0_i32_0 : i32
    scf.if %2 {
      %cst_10 = arith.constant 0.000000e+00 : f32
      %13 = vector.broadcast %cst_10 : f32 to vector<2x128xf32>
      %c0_11 = arith.constant 0 : index
      %c0_12 = arith.constant 0 : index
      %14 = vector.load %arg8[%c0_11, %c0_12] : memref<2x128xf32, #tpu.memory_space<vmem>>, vector<2x128xf32>
      tpu.vector_store %arg8[%c0_11, %c0_12], %13 {strides = array<i32>} : memref<2x128xf32, #tpu.memory_space<vmem>>, vector<2x128xf32>,
    } else {
    }
    %c0 = arith.constant 0 : index
    %c0_1 = arith.constant 0 : index
    %3 = vector.load %arg8[%c0, %c0_1] : memref<2x128xf32, #tpu.memory_space<vmem>>, vector<2x128xf32>
    %c0_2 = arith.constant 0 : index
    %c0_3 = arith.constant 0 : index
    %4 = vector.load %arg2[%c0_2, %c0_3] : memref<2x1024xf32, #tpu.memory_space<vmem>>, vector<2x1024xf32>
    %5 = arith.truncf %4 : vector<2x1024xf32> to vector<2x1024xbf16>
    %c0_4 = arith.constant 0 : index
    %c0_5 = arith.constant 0 : index
    %6 = vector.load %arg3[%c0_4, %c0_5] : memref<1024x128xbf16, #tpu.memory_space<vmem>>, vector<1024x128xbf16>
    %cst = arith.constant dense<0.000000e+00> : vector<2x128xf32>
    %7 = tpu.matmul %5, %6, %cst {dimension_numbers = #tpu.dot_dimension_numbers<[1], [0], [0], [1], [0, 0, 1, 1], [], []>} : vector<2x1024xbf16>, vector<1024x128xbf16>, vector<2x128xf32> -> vector<2x128xf32>
    %8 = arith.addf %3, %7 : vector<2x128xf32>
    %c0_6 = arith.constant 0 : index
    %c0_7 = arith.constant 0 : index
    %9 = vector.load %arg8[%c0_6, %c0_7] : memref<2x128xf32, #tpu.memory_space<vmem>>, vector<2x128xf32>
    tpu.vector_store %arg8[%c0_6, %c0_7], %8 {strides = array<i32>} : memref<2x128xf32, #tpu.memory_space<vmem>>, vector<2x128xf32>,
    %c0_i32_8 = arith.constant 0 : i32
    %10 = arith.cmpi eq, %arg1, %c0_i32_8 : i32
    %11 = arith.extui %10 : i1 to i32
    %c0_i32_9 = arith.constant 0 : i32
    %12 = arith.cmpi ne, %11, %c0_i32_9 : i32
    scf.if %12 {
      %c0_10 = arith.constant 0 : index
      %c0_11 = arith.constant 0 : index
      %13 = vector.load %arg8[%c0_10, %c0_11] : memref<2x128xf32, #tpu.memory_space<vmem>>, vector<2x128xf32>
      %c0_12 = arith.constant 0 : index
      %c0_13 = arith.constant 0 : index
      %14 = vector.load %arg4[%c0_12, %c0_13] : memref<1x128xf32, #tpu.memory_space<vmem>>, vector<1x128xf32>
      %15 = vector.broadcast %14 : vector<1x128xf32> to vector<2x128xf32>
      %16 = arith.addf %13, %15 : vector<2x128xf32>
      %17 = arith.mulf %16, %16 : vector<2x128xf32>
      %cst_14 = arith.constant dense<0.000000e+00> : vector<2xf32>
      %18 = vector.multi_reduction <add>, %17, %cst_14 [1] : vector<2x128xf32> to vector<2xf32>
      %19 = vector.shape_cast %18 : vector<2xf32> to vector<2x1xf32>
      %cst_15 = arith.constant 9.99999996E-13 : f32
      %20 = vector.broadcast %cst_15 : f32 to vector<2x1xf32>
      %21 = arith.addf %19, %20 : vector<2x1xf32>
      %22 = math.rsqrt %21 : vector<2x1xf32>
      %23 = vector.broadcast %22 : vector<2x1xf32> to vector<2x128xf32>
      %24 = arith.mulf %16, %23 : vector<2x128xf32>
      %25 = arith.truncf %24 : vector<2x128xf32> to vector<2x128xbf16>
      %c0_16 = arith.constant 0 : index
      %c0_17 = arith.constant 0 : index
      %26 = vector.load %arg5[%c0_16, %c0_17] : memref<128x128xbf16, #tpu.memory_space<vmem>>, vector<128x128xbf16>
      %cst_18 = arith.constant dense<0.000000e+00> : vector<2x128xf32>
      %27 = tpu.matmul %25, %26, %cst_18 {dimension_numbers = #tpu.dot_dimension_numbers<[1], [0], [0], [1], [0, 0, 1, 1], [], []>} : vector<2x128xbf16>, vector<128x128xbf16>, vector<2x128xf32> -> vector<2x128xf32>
      %c0_19 = arith.constant 0 : index
      %c0_20 = arith.constant 0 : index
      %28 = vector.load %arg6[%c0_19, %c0_20] : memref<1x128xf32, #tpu.memory_space<vmem>>, vector<1x128xf32>
      %29 = vector.broadcast %28 : vector<1x128xf32> to vector<2x128xf32>
      %30 = arith.addf %27, %29 : vector<2x128xf32>
      %c0_21 = arith.constant 0 : index
      %c0_22 = arith.constant 0 : index
      %31 = vector.load %arg7[%c0_21, %c0_22] : memref<2x128xf32, #tpu.memory_space<vmem>>, vector<2x128xf32>
      tpu.vector_store %arg7[%c0_21, %c0_22], %30 {strides = array<i32>} : memref<2x128xf32, #tpu.memory_space<vmem>>, vector<2x128xf32>,
    } else {
    }
    return
  }
  func.func @transform_0(%arg0: i32, %arg1: i32) -> (i32, i32) {
    %c0_i32 = arith.constant 0 : i32
    return %arg0, %arg1 : i32, i32
  }
  func.func @transform_1(%arg0: i32, %arg1: i32) -> (i32, i32) {
    %c0_i32 = arith.constant 0 : i32
    %c0_i32_0 = arith.constant 0 : i32
    return %arg1, %c0_i32 : i32, i32
  }
  func.func @transform_2(%arg0: i32, %arg1: i32) -> (i32, i32) {
    %c0_i32 = arith.constant 0 : i32
    %c0_i32_0 = arith.constant 0 : i32
    %c0_i32_1 = arith.constant 0 : i32
    return %c0_i32, %c0_i32_0 : i32, i32
  }
  func.func @transform_3(%arg0: i32, %arg1: i32) -> (i32, i32) {
    %c0_i32 = arith.constant 0 : i32
    %c0_i32_0 = arith.constant 0 : i32
    %c0_i32_1 = arith.constant 0 : i32
    return %c0_i32, %c0_i32_0 : i32, i32
  }
  func.func @transform_4(%arg0: i32, %arg1: i32) -> (i32, i32) {
    %c0_i32 = arith.constant 0 : i32
    %c0_i32_0 = arith.constant 0 : i32
    %c0_i32_1 = arith.constant 0 : i32
    return %c0_i32, %c0_i32_0 : i32, i32
  }
  func.func @transform_5(%arg0: i32, %arg1: i32) -> (i32, i32) {
    %c0_i32 = arith.constant 0 : i32
    %c0_i32_0 = arith.constant 0 : i32
    return %arg0, %c0_i32 : i32, i32
  }
}

</mosaic_0001>

<bundles_post_ra>
// kernel: tpu_custom_call.1
= control target key start
LH: loop header
LB: loop body
LE: loop exit
PB: predicated region body
PF: predicated region fallthrough
CT: control target
= control target key end

     0   :  { %10 = vsyncpa [#allocation4], 0  ;;  %s1419_s0 = inlined_call_operand.hbm [shape: f32[2,1024], index: 0, kind: input, shape index: {}]   ;;  %s1420_s1 = inlined_call_operand.hbm [shape: bf16[1024,128], index: 1, kind: input, shape index: {}]   ;;  %s1421_s2 = inlined_call_operand.vmem [shape: f32[1,128], index: 2, kind: input, shape index: {}]   ;;  %s1422_s3 = inlined_call_operand.hbm [shape: bf16[128,128], index: 3, kind: input, shape index: {}]   ;;  %s1423_s4 = inlined_call_operand.vmem [shape: f32[1,128], index: 4, kind: input, shape index: {}]   ;;  %s1424_s5 = inlined_call_operand.hbm [shape: f32[2,128], index: 5, kind: output, shape index: {}]  }
   0x1   :  { %11 = vsyncpa [#allocation7], 0 }
   0x2   :  { %12 = vsyncpa [#allocation5], 0  ;;  %s1314_s18 = smov [#allocation6]   ;;  %s1220_s22 = scalar_lea.hbm %s1420_s1, 8192 }
   0x3   :  { %s28_s19 = sshll.u32 %s1314_s18, 4  ;;  %p1221_p0 = scmp.ne.s32.totalorder %s1420_s1, %s1220_s22  ;;  %s29_s19 = int_to_ptr.vmem [resolvable:$true] %s28_s19 }
   0x4   :  { %p1224_p1 = scmp.lt.u32.totalorder %s1220_s22, %s1420_s1 }
   0x6   :  { %p1226_p2 = pnand %p1224_p1, %p1221_p0 }
   0x8   :  { %1229 = shalt.err (!%p1226_p2)
}
   0x9   :  { %s1230_s27 = scalar_lea.vmem %s29_s19, 8192  ;;  %p1235_p4 = scmp.lt.s32.totalorder %s29_s19, %s29_s19 }
   0xa   :  { %p1231_p3 = scmp.ne.s32.totalorder %s29_s19, %s1230_s27  ;;  %p1236_p5 = scmp.lt.s32.totalorder %s1230_s27, %s1230_s27 }
   0xc   :  { %p1237_p6 = por %p1236_p5, %p1235_p4 }
   0xe   :  { %p1238_p7 = pnand %p1237_p6, %p1231_p3 }
  0x10   :  { %1241 = shalt.err (!%p1238_p7)
}
  0x11   :  { %s1315_s28 = smov 64   ;;  %s1316_s29 = smov 4  }
  0x12   :  { %34 = dma.hbm_to_vmem [thread:$0]  %s1420_s1, 8192, %s29_s19, [#allocation7], %s1315_s28, %s1315_s28, %s1316_s29  }
  0x13   :  { %s1317_s7 = smov [#allocation3]   ;;  %s1318_s9 = smov [#allocation8]  }
  0x14   :  { %s19_s8 = sshll.u32 %s1317_s7, 4  ;;  %s42_s10 = sshll.u32 %s1318_s9, 4  ;;  %s20_s8 = int_to_ptr.vmem [resolvable:$true] %s19_s8  ;;  %s43_s10 = int_to_ptr.vmem [resolvable:$true] %s42_s10 }
  0x15   :  { %s1242_s13 = scalar_lea.hbm %s1419_s0, 256 }
  0x16   :  { %p1243_p8 = scmp.ne.s32.totalorder %s1419_s0, %s1242_s13  ;;  %p1246_p9 = scmp.lt.u32.totalorder %s1242_s13, %s1419_s0 }
  0x18   :  { %p1248_p10 = pnand %p1246_p9, %p1243_p8 }
  0x1a   :  { %1251 = shalt.err (!%p1248_p10)
}
  0x1b   :  { %s1252_s1 = scalar_lea.vmem %s20_s8, 256  ;;  %p1257_p12 = scmp.lt.s32.totalorder %s20_s8, %s20_s8 }
  0x1c   :  { %p1253_p11 = scmp.ne.s32.totalorder %s20_s8, %s1252_s1  ;;  %p1258_p13 = scmp.lt.s32.totalorder %s1252_s1, %s1252_s1 }
  0x1e   :  { %p1259_p0 = por %p1258_p13, %p1257_p12 }
  0x20   :  { %p1260_p1 = pnand %p1259_p0, %p1253_p11 }
  0x22   :  { %1263 = shalt.err (!%p1260_p1)
}
  0x23   :  { %22 = dma.hbm_to_vmem [thread:$0]  %s1419_s0, 256, %s20_s8, [#allocation4]  }
  0x24   :  { %s1264_s22 = scalar_lea.hbm %s1422_s3, 1024 }
  0x25   :  { %p1265_p2 = scmp.ne.s32.totalorder %s1422_s3, %s1264_s22  ;;  %p1268_p3 = scmp.lt.u32.totalorder %s1264_s22, %s1422_s3 }
  0x27   :  { %p1270_p4 = pnand %p1268_p3, %p1265_p2 }
  0x29   :  { %1273 = shalt.err (!%p1270_p4)
}
  0x2a   :  { %s1274_s27 = scalar_lea.vmem %s43_s10, 1024  ;;  %p1279_p6 = scmp.lt.s32.totalorder %s43_s10, %s43_s10 }
  0x2b   :  { %p1275_p5 = scmp.ne.s32.totalorder %s43_s10, %s1274_s27  ;;  %p1280_p7 = scmp.lt.s32.totalorder %s1274_s27, %s1274_s27 }
  0x2d   :  { %p1281_p8 = por %p1280_p7, %p1279_p6 }
  0x2f   :  { %p1282_p9 = pnand %p1281_p8, %p1275_p5 }
  0x31   :  { %1285 = shalt.err (!%p1282_p9)
}
  0x32   :  { %48 = dma.hbm_to_vmem [thread:$0]  %s1422_s3, 1024, %s43_s10, [#allocation7], %s1315_s28, %s1315_s28, %s1316_s29  }
  0x33   :  { %1308 = dma.done.wait [#allocation4], 256  }
  0x34   :  { %1309 = vsyncadd [#allocation4], 4294967040 }
  0x35   :  { %1310 = dma.done.wait [#allocation7], 9216  }
  0x36   :  { %1311 = vsyncadd [#allocation7], 4294958080  ;;  %v1144_v0 = vld [vmem:[#allocation6 + $0x40] sm:$0xff]   ;;  %v1148_v4 = vld [vmem:[#allocation6 + $0x48] sm:$0xff]   ;;  %v1319_v22 = vmov 1983009808   ;;  %v75_v24 = vlaneseq }
  0x37   :  { %v1145_v1 = vld [vmem:[#allocation6 + $0xc0] sm:$0xff]   ;;  %1018 = vmatprep.subr.bf16.mxu0 %v1144_v0  ;;  %v1149_v5 = vld [vmem:[#allocation6 + $0xc8] sm:$0xff]   ;;  %v1152_v8 = vld [vmem:[#allocation6 + $0x50] sm:$0xff]   ;;  %v73_v23 = vunpack.c.l.s4 %v1319_v22  ;;  %vm808_vm0 = vcmask 1041408   ;;  %vm1321_vm1 = vmmov 0   ;;  %s1322_s6 = smov [#allocation9]  }
  0x38   :  { %v1146_v2 = vld [vmem:[#allocation6] sm:$0xff]   ;;  %1040 = vmatprep.subr.bf16.mxu1 %v1145_v1  ;;  %v1150_v6 = vld [vmem:[#allocation6 + $0x8] sm:$0xff]   ;;  %v1153_v9 = vld [vmem:[#allocation6 + $0xd0] sm:$0xff]   ;;  %v76_v30 = vshrl.u32 %v75_v24, 7  ;;  %s934_s7 = sshll.u32 %s1322_s6, 4  ;;  %s935_s7 = int_to_ptr.vmem [resolvable:$true] %s934_s7 }
  0x39   :  { %v1147_v3 = vld [vmem:[#allocation6 + $0x80] sm:$0xff]   ;;  %1019 = vmatpush3.bf16.msra.mxu0 %v1146_v2  ;;  %v1151_v7 = vld [vmem:[#allocation6 + $0x88] sm:$0xff]   ;;  %v1154_v10 = vld [vmem:[#allocation6 + $0x10] sm:$0xff]   ;;  %v74_v29 = vunpack.c.0.s8 %v73_v23  ;;  %s1286_s8 = scalar_lea.vmem %s935_s7, 32  ;;  %p1291_p11 = scmp.lt.s32.totalorder %s935_s7, %s935_s7 }
  0x3a   :  { %1041 = vmatpush3.bf16.msra.mxu1 %v1147_v3  ;;  %1020 = vmatprep.subr.bf16.mxu0 %v1148_v4  ;;  %v1155_v11 = vld [vmem:[#allocation6 + $0x90] sm:$0xff]   ;;  %v1156_v12 = vld [vmem:[#allocation6 + $0x58] sm:$0xff]   ;;  %v1160_v16 = vld [vmem:[#allocation6 + $0x60] sm:$0xff]   ;;  %p1287_p10 = scmp.ne.s32.totalorder %s935_s7, %s1286_s8  ;;  %p1292_p12 = scmp.lt.s32.totalorder %s1286_s8, %s1286_s8 }
  0x3b   :  { %1042 = vmatprep.subr.bf16.mxu1 %v1149_v5  ;;  %v1157_v13 = vld [vmem:[#allocation6 + $0xd8] sm:$0xff]   ;;  %v1161_v17 = vld [vmem:[#allocation6 + $0xe0] sm:$0xff]   ;;  %v1164_v20 = vld [vmem:[#allocation6 + $0x68] sm:$0xff]   ;;  %v1395_v35 = vsub.s32 %v74_v29, %v76_v30 }
  0x3c   :  { %v1158_v14 = vld [vmem:[#allocation6 + $0x18] sm:$0xff]   ;;  %v1162_v18 = vld [vmem:[#allocation6 + $0x20] sm:$0xff]   ;;  %v1165_v21 = vld [vmem:[#allocation6 + $0xe8] sm:$0xff]   ;;  %p1293_p13 = por %p1292_p12, %p1291_p11 }
  0x3d   :  { %1021 = vmatpush3.bf16.msra.mxu0 %v1150_v6  ;;  %v1159_v15 = vld [vmem:[#allocation6 + $0x98] sm:$0xff]   ;;  %v1163_v19 = vld [vmem:[#allocation6 + $0xa0] sm:$0xff]   ;;  %v1166_v25 = vld [vmem:[#allocation6 + $0x28] sm:$0xff]  }
  0x3e   :  { %1043 = vmatpush3.bf16.msra.mxu1 %v1151_v7  ;;  %1022 = vmatprep.subr.bf16.mxu0 %v1152_v8  ;;  %v1167_v26 = vld [vmem:[#allocation6 + $0xa8] sm:$0xff]   ;;  %v1168_v27 = vld [vmem:[#allocation6 + $0x70] sm:$0xff]   ;;  %v1172_v33 = vld [vmem:[#allocation6 + $0x78] sm:$0xff]   ;;  %p1294_p0 = pnand %p1293_p13, %p1287_p10 }
  0x3f   :  { %1044 = vmatprep.subr.bf16.mxu1 %v1153_v9  ;;  %v1169_v28 = vld [vmem:[#allocation6 + $0xf0] sm:$0xff]   ;;  %v1173_v34 = vld [vmem:[#allocation6 + $0xf8] sm:$0xff]   ;;  %v1177_v41 = vld [vmem:[#allocation6 + $0x140] sm:$0xff]  }
  0x40   :  { %v1170_v31 = vld [vmem:[#allocation6 + $0x30] sm:$0xff]   ;;  %v1174_v36 = vld [vmem:[#allocation6 + $0x38] sm:$0xff]   ;;  %v1178_v42 = vld [vmem:[#allocation6 + $0x1c0] sm:$0xff]  }
  0x41   :  { %1023 = vmatpush3.bf16.msra.mxu0 %v1154_v10  ;;  %v1171_v32 = vld [vmem:[#allocation6 + $0xb0] sm:$0xff]   ;;  %v1175_v37 = vld [vmem:[#allocation6 + $0xb8] sm:$0xff]   ;;  %v1179_v46 = vld [vmem:[#allocation6 + $0x100] sm:$0xff]  }
  0x42   :  { %1045 = vmatpush3.bf16.msra.mxu1 %v1155_v11  ;;  %1024 = vmatprep.subr.bf16.mxu0 %v1156_v12  ;;  %v67_v38 = vld [vmem:[#allocation3] sm:$0xff]  ;;  %v1180_v49 = vld [vmem:[#allocation6 + $0x180] sm:$0xff]   ;;  %v1181_v51 = vld [vmem:[#allocation6 + $0x148] sm:$0xff]  }
  0x43   :  { %1046 = vmatprep.subr.bf16.mxu1 %v1157_v13  ;;  %v78_v39 = vrot.slane %v67_v38, %v1395_v35  ;;  %v71_v40 = vcombine.high %v67_v38, %v67_v38  ;;  %v1182_v53 = vld [vmem:[#allocation6 + $0x1c8] sm:$0xff]   ;;  %v1185_v56 = vld [vmem:[#allocation6 + $0x150] sm:$0xff]   ;;  %v1189_v60 = vld [vmem:[#allocation6 + $0x158] sm:$0xff]  }
  0x44   :  { %v1183_v54 = vld [vmem:[#allocation6 + $0x108] sm:$0xff]   ;;  %v1186_v57 = vld [vmem:[#allocation6 + $0x1d0] sm:$0xff]   ;;  %v1190_v61 = vld [vmem:[#allocation6 + $0x1d8] sm:$0xff]  }
  0x45   :  { %1025 = vmatpush3.bf16.msra.mxu0 %v1158_v14  ;;  %v86_v43 = vcombine.high %v78_v39, %v78_v39  ;;  %v85_v44 = vrot.slane %v71_v40, %v1395_v35  ;;  %v113_v45 = vpack.c.bf16 %v78_v39, %v78_v39  ;;  %v1184_v55 = vld [vmem:[#allocation6 + $0x188] sm:$0xff]   ;;  %v1187_v58 = vld [vmem:[#allocation6 + $0x110] sm:$0xff]   ;;  %v1191_v62 = vld [vmem:[#allocation6 + $0x118] sm:$0xff]  }
  0x46   :  { %1047 = vmatpush3.bf16.msra.mxu1 %v1159_v15  ;;  %1026 = vmatprep.subr.bf16.mxu0 %v1160_v16  ;;  %v1188_v59 = vld [vmem:[#allocation6 + $0x190] sm:$0xff]   ;;  %v1192_v63 = vld [vmem:[#allocation6 + $0x198] sm:$0xff]   ;;  %v1193_v0 = vld [vmem:[#allocation6 + $0x160] sm:$0xff]  }
  0x47   :  { %1048 = vmatprep.subr.bf16.mxu1 %v1161_v17  ;;  %v114_v47 = vpack.c.bf16 %v86_v43, %v86_v43  ;;  %v87_v48 = vcombine.high %v85_v44, %v85_v44  ;;  %v115_v50 = vpack.c.bf16 %v85_v44, %v85_v44  ;;  %v1194_v1 = vld [vmem:[#allocation6 + $0x1e0] sm:$0xff]   ;;  %v1197_v4 = vld [vmem:[#allocation6 + $0x168] sm:$0xff]   ;;  %v1201_v8 = vld [vmem:[#allocation6 + $0x170] sm:$0xff]  }
  0x48   :  { %v1195_v2 = vld [vmem:[#allocation6 + $0x120] sm:$0xff]   ;;  %v1198_v5 = vld [vmem:[#allocation6 + $0x1e8] sm:$0xff]   ;;  %v1202_v9 = vld [vmem:[#allocation6 + $0x1f0] sm:$0xff]  }
  0x49   :  { %1027 = vmatpush3.bf16.msra.mxu0 %v1162_v18  ;;  %665 = vmatprep.mubr.bf16.mxu0 %v114_v47  ;;  %v116_v52 = vpack.c.bf16 %v87_v48, %v87_v48  ;;  %v1196_v3 = vld [vmem:[#allocation6 + $0x1a0] sm:$0xff]   ;;  %v1199_v6 = vld [vmem:[#allocation6 + $0x128] sm:$0xff]   ;;  %v1203_v10 = vld [vmem:[#allocation6 + $0x130] sm:$0xff]  }
  0x4a   :  { %1049 = vmatpush3.bf16.msra.mxu1 %v1163_v19  ;;  %1028 = vmatprep.subr.bf16.mxu0 %v1164_v20  ;;  %v1200_v7 = vld [vmem:[#allocation6 + $0x1a8] sm:$0xff]   ;;  %v1204_v11 = vld [vmem:[#allocation6 + $0x1b0] sm:$0xff]   ;;  %v1205_v12 = vld [vmem:[#allocation6 + $0x178] sm:$0xff]  }
  0x4b   :  { %1050 = vmatprep.subr.bf16.mxu1 %v1165_v21  ;;  %705 = vmatprep.mubr.bf16.mxu1 %v116_v52  ;;  %v1206_v13 = vld [vmem:[#allocation6 + $0x1f8] sm:$0xff]   ;;  %v1212_v29 = vld [vmem:[#allocation8 + $0x10] sm:$0xff]  }
  0x4c   :  { %v1207_v14 = vld [vmem:[#allocation6 + $0x138] sm:$0xff]  }
  0x4d   :  { %1029 = vmatpush3.bf16.msra.mxu0 %v1166_v25  ;;  %v68_v15 = vld [vmem:[#allocation3 + $0x8] sm:$0xff] }
  0x4e   :  { %1051 = vmatpush3.bf16.msra.mxu1 %v1167_v26  ;;  %1030 = vmatprep.subr.bf16.mxu0 %v1168_v27  ;;  %v1208_v16 = vld [vmem:[#allocation6 + $0x1b8] sm:$0xff]   ;;  %v95_v17 = vrot.slane %v68_v15, %v1395_v35  ;;  %v88_v18 = vcombine.high %v68_v15, %v68_v15  ;;  %v1320_v26 = vmov 0.0   ;;  %v1210_v27 = vld [vmem:[#allocation8] sm:$0xff]  }
  0x4f   :  { %1052 = vmatprep.subr.bf16.mxu1 %v1169_v28  ;;  %65 = vst [vmem:[#allocation2] sm:$0x3] %v1320_v26  ;;  %v1211_v28 = vld [vmem:[#allocation8 + $0x8] sm:$0xff]   ;;  %v1213_v30 = vld [vmem:[#allocation8 + $0x18] sm:$0xff]  }
  0x50   :  { %v103_v19 = vcombine.high %v95_v17, %v95_v17  ;;  %v102_v20 = vrot.slane %v88_v18, %v1395_v35  ;;  %v117_v21 = vpack.c.bf16 %v95_v17, %v95_v17 }
  0x51   :  { %1031 = vmatpush3.bf16.msra.mxu0 %v1170_v31 }
  0x52   :  { %1053 = vmatpush3.bf16.msra.mxu1 %v1171_v32  ;;  %1032 = vmatprep.subr.bf16.mxu0 %v1172_v33  ;;  %v118_v22 = vpack.c.bf16 %v103_v19, %v103_v19  ;;  %v104_v23 = vcombine.high %v102_v20, %v102_v20  ;;  %v119_v24 = vpack.c.bf16 %v102_v20, %v102_v20 }
  0x53   :  { %1054 = vmatprep.subr.bf16.mxu1 %v1173_v34 }
  0x54   :  { %v120_v25 = vpack.c.bf16 %v104_v23, %v104_v23 }
  0x55   :  { %1033 = vmatpush3.bf16.msra.mxu0 %v1174_v36 }
  0x56   :  { %1055 = vmatpush3.bf16.msra.mxu1 %v1175_v37  ;;  %1062 = vmatprep.subr.bf16.mxu0 %v1177_v41  ;;  %v66_v52 = vld [vmem:[#allocation2] sm:$0x3] }
  0x57   :  { %1084 = vmatprep.subr.bf16.mxu1 %v1178_v42 }
  0x58   :  { %666 = vmatmul.mubr.bf16.vlgmr.msra.gmra.mrb[0].mxu0 %v113_v45 }
  0x59   :  { %1063 = vmatpush3.bf16.msra.mxu0 %v1179_v46  ;;  %706 = vmatmul.mubr.bf16.vlgmr.msra.gmra.mrb[0].mxu1 %v115_v50 }
  0x5a   :  { %1064 = vmatprep.subr.bf16.mxu0 %v1181_v51  ;;  %1085 = vmatpush3.bf16.msra.mxu1 %v1180_v49 }
  0x5b   :  { %1086 = vmatprep.subr.bf16.mxu1 %v1182_v53  ;;  %745 = vmatprep.mubr.bf16.mxu0 %v118_v22 }
  0x5c   :  { %785 = vmatprep.mubr.bf16.mxu1 %v120_v25 }
  0x5d   :  { %1065 = vmatpush3.bf16.msra.mxu0 %v1183_v54 }
  0x5e   :  { %1066 = vmatprep.subr.bf16.mxu0 %v1185_v56  ;;  %1087 = vmatpush3.bf16.msra.mxu1 %v1184_v55  ;;  %v1008_v56 = vld [vmem:[%s1421_s2] ss:$0 sm:$0xff] }
  0x5f   :  { %1088 = vmatprep.subr.bf16.mxu1 %v1186_v57 }
  0x61   :  { %1067 = vmatpush3.bf16.msra.mxu0 %v1187_v58 }
  0x62   :  { %1068 = vmatprep.subr.bf16.mxu0 %v1189_v60  ;;  %1089 = vmatpush3.bf16.msra.mxu1 %v1188_v59 }
  0x63   :  { %1090 = vmatprep.subr.bf16.mxu1 %v1190_v61  ;;  %v1214_v61 = vld [vmem:[#allocation8 + $0x20] sm:$0xff]  }
  0x65   :  { %1069 = vmatpush3.bf16.msra.mxu0 %v1191_v62  ;;  %v1215_v62 = vld [vmem:[#allocation8 + $0x28] sm:$0xff]  }
  0x66   :  { %1070 = vmatprep.subr.bf16.mxu0 %v1193_v0  ;;  %1091 = vmatpush3.bf16.msra.mxu1 %v1192_v63  ;;  %v1216_v63 = vld [vmem:[#allocation8 + $0x30] sm:$0xff]   ;;  %v1217_v0 = vld [vmem:[#allocation8 + $0x38] sm:$0xff]  }
  0x67   :  { %1092 = vmatprep.subr.bf16.mxu1 %v1194_v1 }
  0x69   :  { %1071 = vmatpush3.bf16.msra.mxu0 %v1195_v2 }
  0x6a   :  { %1072 = vmatprep.subr.bf16.mxu0 %v1197_v4  ;;  %1093 = vmatpush3.bf16.msra.mxu1 %v1196_v3 }
  0x6b   :  { %1094 = vmatprep.subr.bf16.mxu1 %v1198_v5 }
  0x6d   :  { %1073 = vmatpush3.bf16.msra.mxu0 %v1199_v6  ;;  %v1009_v6 = vld [vmem:[%s1423_s4] ss:$0 sm:$0xff] }
  0x6e   :  { %1074 = vmatprep.subr.bf16.mxu0 %v1201_v8  ;;  %1095 = vmatpush3.bf16.msra.mxu1 %v1200_v7 }
  0x6f   :  { %1096 = vmatprep.subr.bf16.mxu1 %v1202_v9 }
  0x71   :  { %1075 = vmatpush3.bf16.msra.mxu0 %v1203_v10 }
  0x72   :  { %1076 = vmatprep.subr.bf16.mxu0 %v1205_v12  ;;  %1097 = vmatpush3.bf16.msra.mxu1 %v1204_v11 }
  0x73   :  { %1098 = vmatprep.subr.bf16.mxu1 %v1206_v13 }
  0x75   :  { %1077 = vmatpush3.bf16.msra.mxu0 %v1207_v14 }
  0x76   :  { %1099 = vmatpush3.bf16.msra.mxu1 %v1208_v16  ;;  %1115 = vmatprep.subr.bf16.mxu0 %v1320_v26 }
  0x78   :  { %746 = vmatmul.mubr.bf16.vlgmr.msra.gmra.mrb[4].mxu0 %v117_v21 }
  0x79   :  { %786 = vmatmul.mubr.bf16.vlgmr.msra.gmra.mrb[4].mxu1 %v119_v24  ;;  %1116 = vmatpush3.bf16.msra.mxu0 %v1210_v27 }
  0x7a   :  { %1117 = vmatprep.subr.bf16.mxu0 %v1320_v26  ;;  %1131 = vmatprep.mubr.msk.bf16.mxu0 %vm1321_vm1, %v1320_v26 }
  0x7d   :  { %1118 = vmatpush3.bf16.msra.mxu0 %v1211_v28 }
  0x7e   :  { %1119 = vmatprep.subr.bf16.mxu0 %v1320_v26 }
  0x81   :  { %1120 = vmatpush3.bf16.msra.mxu0 %v1212_v29 }
  0x82   :  { %1121 = vmatprep.subr.bf16.mxu0 %v1320_v26 }
  0x85   :  { %1122 = vmatpush3.bf16.msra.mxu0 %v1213_v30 }
  0x86   :  { %1123 = vmatprep.subr.bf16.mxu0 %v1320_v26 }
  0x89   :  { %1124 = vmatpush3.bf16.msra.mxu0 %v1214_v61 }
  0x8a   :  { %1125 = vmatprep.subr.bf16.mxu0 %v1320_v26 }
  0x8d   :  { %1126 = vmatpush3.bf16.msra.mxu0 %v1215_v62 }
  0x8e   :  { %1127 = vmatprep.subr.bf16.mxu0 %v1320_v26 }
  0x91   :  { %1128 = vmatpush3.bf16.msra.mxu0 %v1216_v63 }
  0x92   :  { %1129 = vmatprep.subr.bf16.mxu0 %v1320_v26 }
  0x95   :  { %1130 = vmatpush3.bf16.msra.mxu0 %v1217_v0 }
 0x12b   :  { %v1034_v31 = vpop.f32.mrb[0].mxu0 }
 0x12c   :  { %v1035_v32 = vpop.f32.mrb[1].mxu0  ;;  %v1056_v33 = vpop.f32.mrb[0].mxu1 }
 0x12d   :  { %v1036_v34 = vadd.f32 %v1035_v32, %v1034_v31  ;;  %v1037_v35 = vpop.f32.mrb[2].mxu0  ;;  %v1057_v36 = vpop.f32.mrb[1].mxu1 }
 0x12e   :  { %v1038_v37 = vpop.f32.mrb[3].mxu0  ;;  %v1058_v38 = vadd.f32 %v1057_v36, %v1056_v33  ;;  %v1059_v39 = vpop.f32.mrb[2].mxu1 }
 0x12f   :  { %v1060_v40 = vpop.f32.mrb[3].mxu1 }
 0x130   :  { %v708_v41 = vadd.f32 %v1058_v38, %v1036_v34 }
 0x14b   :  { %v1078_v42 = vpop.f32.mrb[4].mxu0 }
 0x14c   :  { %v1079_v43 = vpop.f32.mrb[5].mxu0  ;;  %v1100_v44 = vpop.f32.mrb[4].mxu1 }
 0x14d   :  { %v1080_v45 = vadd.f32 %v1079_v43, %v1078_v42  ;;  %v1081_v46 = vpop.f32.mrb[6].mxu0  ;;  %v1101_v47 = vpop.f32.mrb[5].mxu1 }
 0x14e   :  { %v1082_v48 = vpop.f32.mrb[7].mxu0  ;;  %v1102_v50 = vadd.f32 %v1101_v47, %v1100_v44  ;;  %v1103_v51 = vpop.f32.mrb[6].mxu1 }
 0x14f   :  { %v748_v49 = vadd.f32 %v1080_v45, %v708_v41  ;;  %v1104_v53 = vpop.f32.mrb[7].mxu1 }
 0x151   :  { %v788_v54 = vadd.f32 %v1102_v50, %v748_v49 }
 0x153   :  { %v793_v55 = vadd.f32 %v788_v54, %v66_v52 }
 0x155   :  { %794 = vst [vmem:[#allocation2] sm:$0x3] %v793_v55 }
 0x15c   :  { %v798_v57 = vld [vmem:[#allocation2] sm:$0x3] }
 0x15d   :  { %v806_v58 = vadd.f32 %v1008_v56, %v798_v57 }
 0x15f   :  { %v807_v59 = vmul.f32 %v806_v58, %v806_v58 }
 0x161   :  { %v809_v60 = vsel %vm808_vm0, %v807_v59, 0.0 }
 0x162   :  { %810 = vadd.xlane.f32.xlu0 %v809_v60 }
 0x1ef   :  { %v811_v1 = vpop.xlane.xlu0 %810 }
 0x1f0   :  { %v812_v2 = vadd.f32 1e-12, %v811_v1 }
 0x1f2   :  { %1218 = vrsqrt.f32 %v812_v2 }
 0x1fc   :  { %v1219_v3 = vpop.eup %1218 }
 0x1fd   :  { %v814_v4 = vmul.f32 %v1219_v3, %v806_v58 }
 0x1ff   :  { %v815_v5 = vpack.c.bf16 %v814_v4, %v814_v4 }
 0x201   :  { %1132 = vmatmul.mubr.bf16.vlgmr.msra.gmra.mrb[8].mxu0 %v815_v5 }
 0x2d4   :  { %v921_v7 = vpop.f32.mrb[8].mxu0 }
 0x2d5   :  { %v922_v8 = vadd.f32 %v1009_v6, %v921_v7  ;;  %v1133_v9 = vpop.f32.mrb[9].mxu0 }
 0x2d6   :  { %v924_v10 = vpop.f32.mrb[10].mxu0 }
 0x2d7   :  { %927 = vst [vmem:[#allocation9] sm:$0x3] %v922_v8  ;;  %v1134_v11 = vpop.f32.mrb[11].mxu0 }
 0x2d8   :  { %1297 = shalt.err (!%p1294_p0)
}
 0x2d9   :  { %s1298_s4 = scalar_lea.hbm %s1424_s5, 32 }
 0x2da   :  { %p1299_p1 = scmp.ne.s32.totalorder %s1424_s5, %s1298_s4  ;;  %p1302_p2 = scmp.lt.u32.totalorder %s1298_s4, %s1424_s5 }
 0x2dc   :  { %p1304_p3 = pnand %p1302_p2, %p1299_p1 }
 0x2de   :  { %1307 = shalt.err (!%p1304_p3)
}
 0x2df   :  { %937 = dma.vmem_to_hbm [thread:$0]  %s935_s7, 32, %s1424_s5, [#allocation5]  }
 0x2e0   :  { %1312 = dma.done.wait [#allocation5], 32  }
 0x2e1   :  { %1313 = vsyncadd [#allocation5], 4294967264 }
 0x2e2   :  { %941 = vsyncpa [#allocation4], 1 }
 0x2e3   :  { %942 = vsyncpa [#allocation7], 1 }
 0x2e4   :  { %943 = vsyncpa [#allocation5], 1 }

// kernel: tpu_custom_call.1
= control target key start
LH: loop header
LB: loop body
LE: loop exit
PB: predicated region body
PF: predicated region fallthrough
CT: control target
= control target key end

     0   :  { %10 = vsyncpa [#allocation4], 0  ;;  %s1419_s0 = inlined_call_operand.hbm [shape: f32[2,1024], index: 0, kind: input, shape index: {}]   ;;  %s1420_s1 = inlined_call_operand.hbm [shape: bf16[1024,128], index: 1, kind: input, shape index: {}]   ;;  %s1421_s2 = inlined_call_operand.vmem [shape: f32[1,128], index: 2, kind: input, shape index: {}]   ;;  %s1422_s3 = inlined_call_operand.hbm [shape: bf16[128,128], index: 3, kind: input, shape index: {}]   ;;  %s1423_s4 = inlined_call_operand.vmem [shape: f32[1,128], index: 4, kind: input, shape index: {}]   ;;  %s1424_s5 = inlined_call_operand.hbm [shape: f32[2,128], index: 5, kind: output, shape index: {}]  }
   0x1   :  { %11 = vsyncpa [#allocation7], 0 }
   0x2   :  { %12 = vsyncpa [#allocation5], 0  ;;  %s1314_s18 = smov [#allocation6]   ;;  %s1220_s22 = scalar_lea.hbm %s1420_s1, 8192 }
   0x3   :  { %s28_s19 = sshll.u32 %s1314_s18, 4  ;;  %p1221_p0 = scmp.ne.s32.totalorder %s1420_s1, %s1220_s22  ;;  %s29_s19 = int_to_ptr.vmem [resolvable:$true] %s28_s19 }
   0x4   :  { %p1224_p1 = scmp.lt.u32.totalorder %s1220_s22, %s1420_s1 }
   0x6   :  { %p1226_p2 = pnand %p1224_p1, %p1221_p0 }
   0x8   :  { %1229 = shalt.err (!%p1226_p2)
}
   0x9   :  { %s1230_s27 = scalar_lea.vmem %s29_s19, 8192  ;;  %p1235_p4 = scmp.lt.s32.totalorder %s29_s19, %s29_s19 }
   0xa   :  { %p1231_p3 = scmp.ne.s32.totalorder %s29_s19, %s1230_s27  ;;  %p1236_p5 = scmp.lt.s32.totalorder %s1230_s27, %s1230_s27 }
   0xc   :  { %p1237_p6 = por %p1236_p5, %p1235_p4 }
   0xe   :  { %p1238_p7 = pnand %p1237_p6, %p1231_p3 }
  0x10   :  { %1241 = shalt.err (!%p1238_p7)
}
  0x11   :  { %s1315_s28 = smov 64   ;;  %s1316_s29 = smov 4  }
  0x12   :  { %34 = dma.hbm_to_vmem [thread:$0]  %s1420_s1, 8192, %s29_s19, [#allocation7], %s1315_s28, %s1315_s28, %s1316_s29  }
  0x13   :  { %s1317_s7 = smov [#allocation3]   ;;  %s1318_s9 = smov [#allocation8]  }
  0x14   :  { %s19_s8 = sshll.u32 %s1317_s7, 4  ;;  %s42_s10 = sshll.u32 %s1318_s9, 4  ;;  %s20_s8 = int_to_ptr.vmem [resolvable:$true] %s19_s8  ;;  %s43_s10 = int_to_ptr.vmem [resolvable:$true] %s42_s10 }
  0x15   :  { %s1242_s13 = scalar_lea.hbm %s1419_s0, 256 }
  0x16   :  { %p1243_p8 = scmp.ne.s32.totalorder %s1419_s0, %s1242_s13  ;;  %p1246_p9 = scmp.lt.u32.totalorder %s1242_s13, %s1419_s0 }
  0x18   :  { %p1248_p10 = pnand %p1246_p9, %p1243_p8 }
  0x1a   :  { %1251 = shalt.err (!%p1248_p10)
}
  0x1b   :  { %s1252_s1 = scalar_lea.vmem %s20_s8, 256  ;;  %p1257_p12 = scmp.lt.s32.totalorder %s20_s8, %s20_s8 }
  0x1c   :  { %p1253_p11 = scmp.ne.s32.totalorder %s20_s8, %s1252_s1  ;;  %p1258_p13 = scmp.lt.s32.totalorder %s1252_s1, %s1252_s1 }
  0x1e   :  { %p1259_p0 = por %p1258_p13, %p1257_p12 }
  0x20   :  { %p1260_p1 = pnand %p1259_p0, %p1253_p11 }
  0x22   :  { %1263 = shalt.err (!%p1260_p1)
}
  0x23   :  { %22 = dma.hbm_to_vmem [thread:$0]  %s1419_s0, 256, %s20_s8, [#allocation4]  }
  0x24   :  { %s1264_s22 = scalar_lea.hbm %s1422_s3, 1024 }
  0x25   :  { %p1265_p2 = scmp.ne.s32.totalorder %s1422_s3, %s1264_s22  ;;  %p1268_p3 = scmp.lt.u32.totalorder %s1264_s22, %s1422_s3 }
  0x27   :  { %p1270_p4 = pnand %p1268_p3, %p1265_p2 }
  0x29   :  { %1273 = shalt.err (!%p1270_p4)
}
  0x2a   :  { %s1274_s27 = scalar_lea.vmem %s43_s10, 1024  ;;  %p1279_p6 = scmp.lt.s32.totalorder %s43_s10, %s43_s10 }
  0x2b   :  { %p1275_p5 = scmp.ne.s32.totalorder %s43_s10, %s1274_s27  ;;  %p1280_p7 = scmp.lt.s32.totalorder %s1274_s27, %s1274_s27 }
  0x2d   :  { %p1281_p8 = por %p1280_p7, %p1279_p6 }
  0x2f   :  { %p1282_p9 = pnand %p1281_p8, %p1275_p5 }
  0x31   :  { %1285 = shalt.err (!%p1282_p9)
}
  0x32   :  { %48 = dma.hbm_to_vmem [thread:$0]  %s1422_s3, 1024, %s43_s10, [#allocation7], %s1315_s28, %s1315_s28, %s1316_s29  }
  0x33   :  { %1308 = dma.done.wait [#allocation4], 256  }
  0x34   :  { %1309 = vsyncadd [#allocation4], 4294967040 }
  0x35   :  { %1310 = dma.done.wait [#allocation7], 9216  }
  0x36   :  { %1311 = vsyncadd [#allocation7], 4294958080  ;;  %v1144_v0 = vld [vmem:[#allocation6 + $0x40] sm:$0xff]   ;;  %v1148_v4 = vld [vmem:[#allocation6 + $0x48] sm:$0xff]   ;;  %v1319_v22 = vmov 1983009808   ;;  %v75_v24 = vlaneseq }
  0x37   :  { %v1145_v1 = vld [vmem:[#allocation6 + $0xc0] sm:$0xff]   ;;  %1018 = vmatprep.subr.bf16.mxu0 %v1144_v0  ;;  %v1149_v5 = vld [vmem:[#allocation6 + $0xc8] sm:$0xff]   ;;  %v1152_v8 = vld [vmem:[#allocation6 + $0x50] sm:$0xff]   ;;  %v73_v23 = vunpack.c.l.s4 %v1319_v22  ;;  %vm808_vm0 = vcmask 1041408   ;;  %vm1321_vm1 = vmmov 0   ;;  %s1322_s6 = smov [#allocation9]  }
  0x38   :  { %v1146_v2 = vld [vmem:[#allocation6] sm:$0xff]   ;;  %1040 = vmatprep.subr.bf16.mxu1 %v1145_v1  ;;  %v1150_v6 = vld [vmem:[#allocation6 + $0x8] sm:$0xff]   ;;  %v1153_v9 = vld [vmem:[#allocation6 + $0xd0] sm:$0xff]   ;;  %v76_v30 = vshrl.u32 %v75_v24, 7  ;;  %s934_s7 = sshll.u32 %s1322_s6, 4  ;;  %s935_s7 = int_to_ptr.vmem [resolvable:$true] %s934_s7 }
  0x39   :  { %v1147_v3 = vld [vmem:[#allocation6 + $0x80] sm:$0xff]   ;;  %1019 = vmatpush3.bf16.msra.mxu0 %v1146_v2  ;;  %v1151_v7 = vld [vmem:[#allocation6 + $0x88] sm:$0xff]   ;;  %v1154_v10 = vld [vmem:[#allocation6 + $0x10] sm:$0xff]   ;;  %v74_v29 = vunpack.c.0.s8 %v73_v23  ;;  %s1286_s8 = scalar_lea.vmem %s935_s7, 32  ;;  %p1291_p11 = scmp.lt.s32.totalorder %s935_s7, %s935_s7 }
  0x3a   :  { %1041 = vmatpush3.bf16.msra.mxu1 %v1147_v3  ;;  %1020 = vmatprep.subr.bf16.mxu0 %v1148_v4  ;;  %v1155_v11 = vld [vmem:[#allocation6 + $0x90] sm:$0xff]   ;;  %v1156_v12 = vld [vmem:[#allocation6 + $0x58] sm:$0xff]   ;;  %v1160_v16 = vld [vmem:[#allocation6 + $0x60] sm:$0xff]   ;;  %p1287_p10 = scmp.ne.s32.totalorder %s935_s7, %s1286_s8  ;;  %p1292_p12 = scmp.lt.s32.totalorder %s1286_s8, %s1286_s8 }
  0x3b   :  { %1042 = vmatprep.subr.bf16.mxu1 %v1149_v5  ;;  %v1157_v13 = vld [vmem:[#allocation6 + $0xd8] sm:$0xff]   ;;  %v1161_v17 = vld [vmem:[#allocation6 + $0xe0] sm:$0xff]   ;;  %v1164_v20 = vld [vmem:[#allocation6 + $0x68] sm:$0xff]   ;;  %v1395_v35 = vsub.s32 %v74_v29, %v76_v30 }
  0x3c   :  { %v1158_v14 = vld [vmem:[#allocation6 + $0x18] sm:$0xff]   ;;  %v1162_v18 = vld [vmem:[#allocation6 + $0x20] sm:$0xff]   ;;  %v1165_v21 = vld [vmem:[#allocation6 + $0xe8] sm:$0xff]   ;;  %p1293_p13 = por %p1292_p12, %p1291_p11 }
  0x3d   :  { %1021 = vmatpush3.bf16.msra.mxu0 %v1150_v6  ;;  %v1159_v15 = vld [vmem:[#allocation6 + $0x98] sm:$0xff]   ;;  %v1163_v19 = vld [vmem:[#allocation6 + $0xa0] sm:$0xff]   ;;  %v1166_v25 = vld [vmem:[#allocation6 + $0x28] sm:$0xff]  }
  0x3e   :  { %1043 = vmatpush3.bf16.msra.mxu1 %v1151_v7  ;;  %1022 = vmatprep.subr.bf16.mxu0 %v1152_v8  ;;  %v1167_v26 = vld [vmem:[#allocation6 + $0xa8] sm:$0xff]   ;;  %v1168_v27 = vld [vmem:[#allocation6 + $0x70] sm:$0xff]   ;;  %v1172_v33 = vld [vmem:[#allocation6 + $0x78] sm:$0xff]   ;;  %p1294_p0 = pnand %p1293_p13, %p1287_p10 }
  0x3f   :  { %1044 = vmatprep.subr.bf16.mxu1 %v1153_v9  ;;  %v1169_v28 = vld [vmem:[#allocation6 + $0xf0] sm:$0xff]   ;;  %v1173_v34 = vld [vmem:[#allocation6 + $0xf8] sm:$0xff]   ;;  %v1177_v41 = vld [vmem:[#allocation6 + $0x140] sm:$0xff]  }
  0x40   :  { %v1170_v31 = vld [vmem:[#allocation6 + $0x30] sm:$0xff]   ;;  %v1174_v36 = vld [vmem:[#allocation6 + $0x38] sm:$0xff]   ;;  %v1178_v42 = vld [vmem:[#allocation6 + $0x1c0] sm:$0xff]  }
  0x41   :  { %1023 = vmatpush3.bf16.msra.mxu0 %v1154_v10  ;;  %v1171_v32 = vld [vmem:[#allocation6 + $0xb0] sm:$0xff]   ;;  %v1175_v37 = vld [vmem:[#allocation6 + $0xb8] sm:$0xff]   ;;  %v1179_v46 = vld [vmem:[#allocation6 + $0x100] sm:$0xff]  }
  0x42   :  { %1045 = vmatpush3.bf16.msra.mxu1 %v1155_v11  ;;  %1024 = vmatprep.subr.bf16.mxu0 %v1156_v12  ;;  %v67_v38 = vld [vmem:[#allocation3] sm:$0xff]  ;;  %v1180_v49 = vld [vmem:[#allocation6 + $0x180] sm:$0xff]   ;;  %v1181_v51 = vld [vmem:[#allocation6 + $0x148] sm:$0xff]  }
  0x43   :  { %1046 = vmatprep.subr.bf16.mxu1 %v1157_v13  ;;  %v78_v39 = vrot.slane %v67_v38, %v1395_v35  ;;  %v71_v40 = vcombine.high %v67_v38, %v67_v38  ;;  %v1182_v53 = vld [vmem:[#allocation6 + $0x1c8] sm:$0xff]   ;;  %v1185_v56 = vld [vmem:[#allocation6 + $0x150] sm:$0xff]   ;;  %v1189_v60 = vld [vmem:[#allocation6 + $0x158] sm:$0xff]  }
  0x44   :  { %v1183_v54 = vld [vmem:[#allocation6 + $0x108] sm:$0xff]   ;;  %v1186_v57 = vld [vmem:[#allocation6 + $0x1d0] sm:$0xff]   ;;  %v1190_v61 = vld [vmem:[#allocation6 + $0x1d8] sm:$0xff]  }
  0x45   :  { %1025 = vmatpush3.bf16.msra.mxu0 %v1158_v14  ;;  %v86_v43 = vcombine.high %v78_v39, %v78_v39  ;;  %v85_v44 = vrot.slane %v71_v40, %v1395_v35  ;;  %v113_v45 = vpack.c.bf16 %v78_v39, %v78_v39  ;;  %v1184_v55 = vld [vmem:[#allocation6 + $0x188] sm:$0xff]   ;;  %v1187_v58 = vld [vmem:[#allocation6 + $0x110] sm:$0xff]   ;;  %v1191_v62 = vld [vmem:[#allocation6 + $0x118] sm:$0xff]  }
  0x46   :  { %1047 = vmatpush3.bf16.msra.mxu1 %v1159_v15  ;;  %1026 = vmatprep.subr.bf16.mxu0 %v1160_v16  ;;  %v1188_v59 = vld [vmem:[#allocation6 + $0x190] sm:$0xff]   ;;  %v1192_v63 = vld [vmem:[#allocation6 + $0x198] sm:$0xff]   ;;  %v1193_v0 = vld [vmem:[#allocation6 + $0x160] sm:$0xff]  }
  0x47   :  { %1048 = vmatprep.subr.bf16.mxu1 %v1161_v17  ;;  %v114_v47 = vpack.c.bf16 %v86_v43, %v86_v43  ;;  %v87_v48 = vcombine.high %v85_v44, %v85_v44  ;;  %v115_v50 = vpack.c.bf16 %v85_v44, %v85_v44  ;;  %v1194_v1 = vld [vmem:[#allocation6 + $0x1e0] sm:$0xff]   ;;  %v1197_v4 = vld [vmem:[#allocation6 + $0x168] sm:$0xff]   ;;  %v1201_v8 = vld [vmem:[#allocation6 + $0x170] sm:$0xff]  }
  0x48   :  { %v1195_v2 = vld [vmem:[#allocation6 + $0x120] sm:$0xff]   ;;  %v1198_v5 = vld [vmem:[#allocation6 + $0x1e8] sm:$0xff]   ;;  %v1202_v9 = vld [vmem:[#allocation6 + $0x1f0] sm:$0xff]  }
  0x49   :  { %1027 = vmatpush3.bf16.msra.mxu0 %v1162_v18  ;;  %665 = vmatprep.mubr.bf16.mxu0 %v114_v47  ;;  %v116_v52 = vpack.c.bf16 %v87_v48, %v87_v48  ;;  %v1196_v3 = vld [vmem:[#allocation6 + $0x1a0] sm:$0xff]   ;;  %v1199_v6 = vld [vmem:[#allocation6 + $0x128] sm:$0xff]   ;;  %v1203_v10 = vld [vmem:[#allocation6 + $0x130] sm:$0xff]  }
  0x4a   :  { %1049 = vmatpush3.bf16.msra.mxu1 %v1163_v19  ;;  %1028 = vmatprep.subr.bf16.mxu0 %v1164_v20  ;;  %v1200_v7 = vld [vmem:[#allocation6 + $0x1a8] sm:$0xff]   ;;  %v1204_v11 = vld [vmem:[#allocation6 + $0x1b0] sm:$0xff]   ;;  %v1205_v12 = vld [vmem:[#allocation6 + $0x178] sm:$0xff]  }
  0x4b   :  { %1050 = vmatprep.subr.bf16.mxu1 %v1165_v21  ;;  %705 = vmatprep.mubr.bf16.mxu1 %v116_v52  ;;  %v1206_v13 = vld [vmem:[#allocation6 + $0x1f8] sm:$0xff]   ;;  %v1212_v29 = vld [vmem:[#allocation8 + $0x10] sm:$0xff]  }
  0x4c   :  { %v1207_v14 = vld [vmem:[#allocation6 + $0x138] sm:$0xff]  }
  0x4d   :  { %1029 = vmatpush3.bf16.msra.mxu0 %v1166_v25  ;;  %v68_v15 = vld [vmem:[#allocation3 + $0x8] sm:$0xff] }
  0x4e   :  { %1051 = vmatpush3.bf16.msra.mxu1 %v1167_v26  ;;  %1030 = vmatprep.subr.bf16.mxu0 %v1168_v27  ;;  %v1208_v16 = vld [vmem:[#allocation6 + $0x1b8] sm:$0xff]   ;;  %v95_v17 = vrot.slane %v68_v15, %v1395_v35  ;;  %v88_v18 = vcombine.high %v68_v15, %v68_v15  ;;  %v1320_v26 = vmov 0.0   ;;  %v1210_v27 = vld [vmem:[#allocation8] sm:$0xff]  }
  0x4f   :  { %1052 = vmatprep.subr.bf16.mxu1 %v1169_v28  ;;  %65 = vst [vmem:[#allocation2] sm:$0x3] %v1320_v26  ;;  %v1211_v28 = vld [vmem:[#allocation8 + $0x8] sm:$0xff]   ;;  %v1213_v30 = vld [vmem:[#allocation8 + $0x18] sm:$0xff]  }
  0x50   :  { %v103_v19 = vcombine.high %v95_v17, %v95_v17  ;;  %v102_v20 = vrot.slane %v88_v18, %v1395_v35  ;;  %v117_v21 = vpack.c.bf16 %v95_v17, %v95_v17 }
  0x51   :  { %1031 = vmatpush3.bf16.msra.mxu0 %v1170_v31 }
  0x52   :  { %1053 = vmatpush3.bf16.msra.mxu1 %v1171_v32  ;;  %1032 = vmatprep.subr.bf16.mxu0 %v1172_v33  ;;  %v118_v22 = vpack.c.bf16 %v103_v19, %v103_v19  ;;  %v104_v23 = vcombine.high %v102_v20, %v102_v20  ;;  %v119_v24 = vpack.c.bf16 %v102_v20, %v102_v20 }
  0x53   :  { %1054 = vmatprep.subr.bf16.mxu1 %v1173_v34 }
  0x54   :  { %v120_v25 = vpack.c.bf16 %v104_v23, %v104_v23 }
  0x55   :  { %1033 = vmatpush3.bf16.msra.mxu0 %v1174_v36 }
  0x56   :  { %1055 = vmatpush3.bf16.msra.mxu1 %v1175_v37  ;;  %1062 = vmatprep.subr.bf16.mxu0 %v1177_v41  ;;  %v66_v52 = vld [vmem:[#allocation2] sm:$0x3] }
  0x57   :  { %1084 = vmatprep.subr.bf16.mxu1 %v1178_v42 }
  0x58   :  { %666 = vmatmul.mubr.bf16.vlgmr.msra.gmra.mrb[0].mxu0 %v113_v45 }
  0x59   :  { %1063 = vmatpush3.bf16.msra.mxu0 %v1179_v46  ;;  %706 = vmatmul.mubr.bf16.vlgmr.msra.gmra.mrb[0].mxu1 %v115_v50 }
  0x5a   :  { %1064 = vmatprep.subr.bf16.mxu0 %v1181_v51  ;;  %1085 = vmatpush3.bf16.msra.mxu1 %v1180_v49 }
  0x5b   :  { %1086 = vmatprep.subr.bf16.mxu1 %v1182_v53  ;;  %745 = vmatprep.mubr.bf16.mxu0 %v118_v22 }
  0x5c   :  { %785 = vmatprep.mubr.bf16.mxu1 %v120_v25 }
  0x5d   :  { %1065 = vmatpush3.bf16.msra.mxu0 %v1183_v54 }
  0x5e   :  { %1066 = vmatprep.subr.bf16.mxu0 %v1185_v56  ;;  %1087 = vmatpush3.bf16.msra.mxu1 %v1184_v55  ;;  %v1008_v56 = vld [vmem:[%s1421_s2] ss:$0 sm:$0xff] }
  0x5f   :  { %1088 = vmatprep.subr.bf16.mxu1 %v1186_v57 }
  0x61   :  { %1067 = vmatpush3.bf16.msra.mxu0 %v1187_v58 }
  0x62   :  { %1068 = vmatprep.subr.bf16.mxu0 %v1189_v60  ;;  %1089 = vmatpush3.bf16.msra.mxu1 %v1188_v59 }
  0x63   :  { %1090 = vmatprep.subr.bf16.mxu1 %v1190_v61  ;;  %v1214_v61 = vld [vmem:[#allocation8 + $0x20] sm:$0xff]  }
  0x65   :  { %1069 = vmatpush3.bf16.msra.mxu0 %v1191_v62  ;;  %v1215_v62 = vld [vmem:[#allocation8 + $0x28] sm:$0xff]  }
  0x66   :  { %1070 = vmatprep.subr.bf16.mxu0 %v1193_v0  ;;  %1091 = vmatpush3.bf16.msra.mxu1 %v1192_v63  ;;  %v1216_v63 = vld [vmem:[#allocation8 + $0x30] sm:$0xff]   ;;  %v1217_v0 = vld [vmem:[#allocation8 + $0x38] sm:$0xff]  }
  0x67   :  { %1092 = vmatprep.subr.bf16.mxu1 %v1194_v1 }
  0x69   :  { %1071 = vmatpush3.bf16.msra.mxu0 %v1195_v2 }
  0x6a   :  { %1072 = vmatprep.subr.bf16.mxu0 %v1197_v4  ;;  %1093 = vmatpush3.bf16.msra.mxu1 %v1196_v3 }
  0x6b   :  { %1094 = vmatprep.subr.bf16.mxu1 %v1198_v5 }
  0x6d   :  { %1073 = vmatpush3.bf16.msra.mxu0 %v1199_v6  ;;  %v1009_v6 = vld [vmem:[%s1423_s4] ss:$0 sm:$0xff] }
  0x6e   :  { %1074 = vmatprep.subr.bf16.mxu0 %v1201_v8  ;;  %1095 = vmatpush3.bf16.msra.mxu1 %v1200_v7 }
  0x6f   :  { %1096 = vmatprep.subr.bf16.mxu1 %v1202_v9 }
  0x71   :  { %1075 = vmatpush3.bf16.msra.mxu0 %v1203_v10 }
  0x72   :  { %1076 = vmatprep.subr.bf16.mxu0 %v1205_v12  ;;  %1097 = vmatpush3.bf16.msra.mxu1 %v1204_v11 }
  0x73   :  { %1098 = vmatprep.subr.bf16.mxu1 %v1206_v13 }
  0x75   :  { %1077 = vmatpush3.bf16.msra.mxu0 %v1207_v14 }
  0x76   :  { %1099 = vmatpush3.bf16.msra.mxu1 %v1208_v16  ;;  %1115 = vmatprep.subr.bf16.mxu0 %v1320_v26 }
  0x78   :  { %746 = vmatmul.mubr.bf16.vlgmr.msra.gmra.mrb[4].mxu0 %v117_v21 }
  0x79   :  { %786 = vmatmul.mubr.bf16.vlgmr.msra.gmra.mrb[4].mxu1 %v119_v24  ;;  %1116 = vmatpush3.bf16.msra.mxu0 %v1210_v27 }
  0x7a   :  { %1117 = vmatprep.subr.bf16.mxu0 %v1320_v26  ;;  %1131 = vmatprep.mubr.msk.bf16.mxu0 %vm1321_vm1, %v1320_v26 }
  0x7d   :  { %1118 = vmatpush3.bf16.msra.mxu0 %v1211_v28 }
  0x7e   :  { %1119 = vmatprep.subr.bf16.mxu0 %v1320_v26 }
  0x81   :  { %1120 = vmatpush3.bf16.msra.mxu0 %v1212_v29 }
  0x82   :  { %1121 = vmatprep.subr.bf16.mxu0 %v1320_v26 }
  0x85   :  { %1122 = vmatpush3.bf16.msra.mxu0 %v1213_v30 }
  0x86   :  { %1123 = vmatprep.subr.bf16.mxu0 %v1320_v26 }
  0x89   :  { %1124 = vmatpush3.bf16.msra.mxu0 %v1214_v61 }
  0x8a   :  { %1125 = vmatprep.subr.bf16.mxu0 %v1320_v26 }
  0x8d   :  { %1126 = vmatpush3.bf16.msra.mxu0 %v1215_v62 }
  0x8e   :  { %1127 = vmatprep.subr.bf16.mxu0 %v1320_v26 }
  0x91   :  { %1128 = vmatpush3.bf16.msra.mxu0 %v1216_v63 }
  0x92   :  { %1129 = vmatprep.subr.bf16.mxu0 %v1320_v26 }
  0x95   :  { %1130 = vmatpush3.bf16.msra.mxu0 %v1217_v0 }
 0x12b   :  { %v1034_v31 = vpop.f32.mrb[0].mxu0 }
 0x12c   :  { %v1035_v32 = vpop.f32.mrb[1].mxu0  ;;  %v1056_v33 = vpop.f32.mrb[0].mxu1 }
 0x12d   :  { %v1036_v34 = vadd.f32 %v1035_v32, %v1034_v31  ;;  %v1037_v35 = vpop.f32.mrb[2].mxu0  ;;  %v1057_v36 = vpop.f32.mrb[1].mxu1 }
 0x12e   :  { %v1038_v37 = vpop.f32.mrb[3].mxu0  ;;  %v1058_v38 = vadd.f32 %v1057_v36, %v1056_v33  ;;  %v1059_v39 = vpop.f32.mrb[2].mxu1 }
 0x12f   :  { %v1060_v40 = vpop.f32.mrb[3].mxu1 }
 0x130   :  { %v708_v41 = vadd.f32 %v1058_v38, %v1036_v34 }
 0x14b   :  { %v1078_v42 = vpop.f32.mrb[4].mxu0 }
 0x14c   :  { %v1079_v43 = vpop.f32.mrb[5].mxu0  ;;  %v1100_v44 = vpop.f32.mrb[4].mxu1 }
 0x14d   :  { %v1080_v45 = vadd.f32 %v1079_v43, %v1078_v42  ;;  %v1081_v46 = vpop.f32.mrb[6].mxu0  ;;  %v1101_v47 = vpop.f32.mrb[5].mxu1 }
 0x14e   :  { %v1082_v48 = vpop.f32.mrb[7].mxu0  ;;  %v1102_v50 = vadd.f32 %v1101_v47, %v1100_v44  ;;  %v1103_v51 = vpop.f32.mrb[6].mxu1 }
 0x14f   :  { %v748_v49 = vadd.f32 %v1080_v45, %v708_v41  ;;  %v1104_v53 = vpop.f32.mrb[7].mxu1 }
 0x151   :  { %v788_v54 = vadd.f32 %v1102_v50, %v748_v49 }
 0x153   :  { %v793_v55 = vadd.f32 %v788_v54, %v66_v52 }
 0x155   :  { %794 = vst [vmem:[#allocation2] sm:$0x3] %v793_v55 }
 0x15c   :  { %v798_v57 = vld [vmem:[#allocation2] sm:$0x3] }
 0x15d   :  { %v806_v58 = vadd.f32 %v1008_v56, %v798_v57 }
 0x15f   :  { %v807_v59 = vmul.f32 %v806_v58, %v806_v58 }
 0x161   :  { %v809_v60 = vsel %vm808_vm0, %v807_v59, 0.0 }
 0x162   :  { %810 = vadd.xlane.f32.xlu0 %v809_v60 }
 0x1ef   :  { %v811_v1 = vpop.xlane.xlu0 %810 }
 0x1f0   :  { %v812_v2 = vadd.f32 1e-12, %v811_v1 }
 0x1f2   :  { %1218 = vrsqrt.f32 %v812_v2 }
 0x1fc   :  { %v1219_v3 = vpop.eup %1218 }
 0x1fd   :  { %v814_v4 = vmul.f32 %v1219_v3, %v806_v58 }
 0x1ff   :  { %v815_v5 = vpack.c.bf16 %v814_v4, %v814_v4 }
 0x201   :  { %1132 = vmatmul.mubr.bf16.vlgmr.msra.gmra.mrb[8].mxu0 %v815_v5 }
 0x2d4   :  { %v921_v7 = vpop.f32.mrb[8].mxu0 }
 0x2d5   :  { %v922_v8 = vadd.f32 %v1009_v6, %v921_v7  ;;  %v1133_v9 = vpop.f32.mrb[9].mxu0 }
 0x2d6   :  { %v924_v10 = vpop.f32.mrb[10].mxu0 }
 0x2d7   :  { %927 = vst [vmem:[#allocation9] sm:$0x3] %v922_v8  ;;  %v1134_v11 = vpop.f32.mrb[11].mxu0 }
 0x2d8   :  { %1297 = shalt.err (!%p1294_p0)
}
 0x2d9   :  { %s1298_s4 = scalar_lea.hbm %s1424_s5, 32 }
 0x2da   :  { %p1299_p1 = scmp.ne.s32.totalorder %s1424_s5, %s1298_s4  ;;  %p1302_p2 = scmp.lt.u32.totalorder %s1298_s4, %s1424_s5 }
 0x2dc   :  { %p1304_p3 = pnand %p1302_p2, %p1299_p1 }
 0x2de   :  { %1307 = shalt.err (!%p1304_p3)
}
 0x2df   :  { %937 = dma.vmem_to_hbm [thread:$0]  %s935_s7, 32, %s1424_s5, [#allocation5]  }
 0x2e0   :  { %1312 = dma.done.wait [#allocation5], 32  }
 0x2e1   :  { %1313 = vsyncadd [#allocation5], 4294967264 }
 0x2e2   :  { %941 = vsyncpa [#allocation4], 1 }
 0x2e3   :  { %942 = vsyncpa [#allocation7], 1 }
 0x2e4   :  { %943 = vsyncpa [#allocation5], 1 }

</bundles_post_ra>
